<compile_context>
chip_gen: v7x
topology: tpu7x:2x2x1
jax: 0.10.0
libtpu: 0.0.40
codegen_flags: <defaults>
</compile_context>

<pallas_src>
import jax
import jax.numpy as jnp
from jax.experimental import pallas as pl
from jax.experimental.pallas import tpu as pltpu

PAD_INDEX = 0  # AAVocab.PAD[1]

# Byte-sized tiling (perf review): ~8 MiB per double-buffered input tile.
TILE_BUDGET_BYTES = 8 * 1024 * 1024
# Scoped-VMEM limit: <= physical VMEM on every generation (v5e/v6e 128 MiB,
# v7x 64 MiB) and == the v6e/v7x scoped default, > v5e's 16 MiB default.
VMEM_LIMIT_BYTES = 32 * 1024 * 1024
ROW_TILE_CAP = 256  # row cap for the tiled-vocab fallback path


def _round_down(x: int, m: int) -> int:
    return (x // m) * m


def _choose_tiles(N: int, V: int, itemsize: int, budget: int):
    """Pick (tm, tv) in bytes.  Prefer tv == V (single vocab pass, 1-D grid)."""
    if N < 8:
        return N, V  # block == full array dims (allowed by Pallas)
    full_row_cap = budget // (V * itemsize)
    if full_row_cap >= 8:
        tm = max(8, min(_round_down(N, 8), _round_down(full_row_cap, 8)))
        if N >= 16:  # keep n_i >= 2 so both v7x TensorCores get row blocks
            tm = min(tm, max(8, _round_down(N - 1, 8)))
        return tm, V
    # Vocab too wide for even 8 full rows per tile: tile the vocab axis too.
    tm = max(8, min(_round_down(N, 8), ROW_TILE_CAP))
    tv = max(128, _round_down(budget // (tm * itemsize), 128))
    return tm, tv


def _token_nll_rowsum_1pass_kernel(logp_ref, tgt_ref, rowsum_ref):
    """tv == V: one vocab pass per row block, no resident accumulator."""
    logp = logp_ref[...]                                   # native dtype (bf16 stays packed)
    tm, tv = logp.shape
    col = jax.lax.broadcasted_iota(jnp.int32, (tm, tv), 1)
    hit = col == tgt_ref[...]                              # PAD / padded rows carry -1
    sel = jnp.where(hit, logp, jnp.zeros((), dtype=logp.dtype))
    # At most one non-zero per row -> exact regardless of accumulation dtype.
    rowsum_ref[...] = jnp.sum(sel, axis=1, keepdims=True, dtype=jnp.float32)


def _token_nll_rowsum_acc_kernel(logp_ref, tgt_ref, rowsum_ref):
    """Fallback for very wide vocabularies: tiled reduction over the vocab axis."""
    k = pl.program_id(1)  # vocab (reduction) axis -- innermost, "arbitrary"

    @pl.when(k == 0)
    def _():
        rowsum_ref[...] = jnp.zeros_like(rowsum_ref)

    logp = logp_ref[...]
    tm, tv = logp.shape
    col = k * tv + jax.lax.broadcasted_iota(jnp.int32, (tm, tv), 1)
    hit = col == tgt_ref[...]
    sel = jnp.where(hit, logp, jnp.zeros((), dtype=logp.dtype))
    rowsum_ref[...] += jnp.sum(sel, axis=1, keepdims=True, dtype=jnp.float32)


def bert_lm_loss(token_pred_out, classifier_out, target_token_indices,
                 target_clf_labels, *, row_tile=None, vocab_tile=None,
                 tile_budget_bytes=TILE_BUDGET_BYTES):
    """token_pred_out: [B,S,V] log-probs (any float dtype); classifier_out: [B,C]
    log-probs; target_token_indices: [B,S] int; target_clf_labels: [B] int."""
    B, S, V = token_pred_out.shape
    N = B * S

    logp = token_pred_out.reshape(N, V)                    # native dtype, no up-cast
    tok_tgt = target_token_indices.reshape(N).astype(jnp.int32)
    itemsize = jnp.dtype(logp.dtype).itemsize

    # ---- tile selection (bytes, not elements) ----
    if row_tile is not None or vocab_tile is not None:
        tm = row_tile if row_tile is not None else (
            N if N < 8 else max(8, _round_down(min(N, ROW_TILE_CAP), 8)))
        tv = vocab_tile if vocab_tile is not None else V
    else:
        tm, tv = _choose_tiles(N, V, itemsize, tile_budget_bytes)

    n_i = pl.cdiv(N, tm)
    n_k = pl.cdiv(V, tv)
    n_pad = n_i * tm

    # Remap PAD targets (ignore_index) and padded rows to -1: they never match a
    # vocab column, so they contribute exactly 0 and garbage data in ragged
    # boundary blocks is never selected (select, not multiply).
    tgt_eff = jnp.where(tok_tgt == PAD_INDEX, jnp.int32(-1), tok_tgt)
    if n_pad > N:
        tgt_eff = jnp.pad(tgt_eff, (0, n_pad - N), constant_values=-1)
    tgt_eff = tgt_eff.reshape(n_pad, 1)

    cost = pl.CostEstimate(
        flops=2 * N * V,
        transcendentals=0,
        bytes_accessed=N * V * itemsize + 2 * n_pad * 4)

    if n_k == 1:
        # Collapsed layout: 1-D parallel row grid, full-vocab contiguous rows.
        row_sums = pl.pallas_call(
            _token_nll_rowsum_1pass_kernel,
            out_shape=jax.ShapeDtypeStruct((n_pad, 1), jnp.float32),
            grid_spec=pltpu.PrefetchScalarGridSpec(
                num_scalar_prefetch=0,
                grid=(n_i,),
                in_specs=[
                    pl.BlockSpec((tm, tv), lambda i: (i, 0)),   # streamed log-probs
                    pl.BlockSpec((tm, 1), lambda i: (i, 0)),    # per-row targets
                ],
                out_specs=pl.BlockSpec((tm, 1), lambda i: (i, 0)),
            ),
            compiler_params=pltpu.CompilerParams(
                dimension_semantics=("parallel",),
                vmem_limit_bytes=VMEM_LIMIT_BYTES),
            cost_estimate=cost,
        )(logp, tgt_eff)
    else:
        # Wide-vocab fallback: resident per-row accumulator across the vocab axis.
        row_sums = pl.pallas_call(
            _token_nll_rowsum_acc_kernel,
            out_shape=jax.ShapeDtypeStruct((n_pad, 1), jnp.float32),
            grid_spec=pltpu.PrefetchScalarGridSpec(
                num_scalar_prefetch=0,
                grid=(n_i, n_k),                                 # reduction axis last
                in_specs=[
                    pl.BlockSpec((tm, tv), lambda i, k: (i, k)),
                    pl.BlockSpec((tm, 1), lambda i, k: (i, 0)),
                ],
                out_specs=pl.BlockSpec((tm, 1), lambda i, k: (i, 0)),
            ),
            compiler_params=pltpu.CompilerParams(
                dimension_semantics=("parallel", "arbitrary"),
                vmem_limit_bytes=VMEM_LIMIT_BYTES),
            cost_estimate=cost,
        )(logp, tgt_eff)

    # Final tiny reductions + classifier term in plain JAX (O(B*S + B*C) reads).
    tok_count = jnp.sum((tok_tgt != PAD_INDEX).astype(jnp.float32))
    # NOTE: matches torch.nn.NLLLoss(reduction='mean') -- all-PAD targets give 0/0 = NaN.
    token_pred_loss = -jnp.sum(row_sums) / tok_count

    clf_logp = classifier_out.astype(jnp.float32)
    clf_tgt = target_clf_labels.astype(jnp.int32)
    clf_gathered = jnp.take_along_axis(clf_logp, clf_tgt[:, None], axis=-1)[:, 0]
    clf_mask = (clf_tgt != PAD_INDEX).astype(jnp.float32)
    clf_loss = -jnp.sum(clf_gathered * clf_mask) / jnp.sum(clf_mask)

    return token_pred_loss + clf_loss


def _reference_loss(tok_logp, clf_logp, tok_tgt, clf_tgt):
    """Pure-JAX NLLLoss(ignore_index=PAD, reduction='mean') reference."""
    tok_logp = tok_logp.astype(jnp.float32)
    clf_logp = clf_logp.astype(jnp.float32)
    g = jnp.take_along_axis(tok_logp, tok_tgt[..., None], axis=-1)[..., 0]
    m = (tok_tgt != PAD_INDEX).astype(jnp.float32)
    tok_loss = -jnp.sum(g * m) / jnp.sum(m)
    gc = jnp.take_along_axis(clf_logp, clf_tgt[:, None], axis=-1)[:, 0]
    mc = (clf_tgt != PAD_INDEX).astype(jnp.float32)
    clf_loss = -jnp.sum(gc * mc) / jnp.sum(mc)
    return tok_loss + clf_loss


if __name__ == "__main__":
    key = jax.random.PRNGKey(0)

    # ---- Test 1: f32, auto tiling -> collapsed n_k == 1 path, 1-D parallel grid ----
    k1, k2, k3, k4 = jax.random.split(key, 4)
    B, S, V, C = 2, 8, 32, 4
    token_pred_out = jax.nn.log_softmax(
        jax.random.normal(k1, (B, S, V), dtype=jnp.float32), axis=-1)
    classifier_out = jax.nn.log_softmax(
        jax.random.normal(k2, (B, C), dtype=jnp.float32), axis=-1)
    target_token_indices = jax.random.randint(k3, (B, S), 0, V, dtype=jnp.int32)
    target_token_indices = target_token_indices.at[0, 0].set(PAD_INDEX)  # ignore_index hit
    target_clf_labels = jax.random.randint(k4, (B,), 1, C, dtype=jnp.int32)

    loss1 = bert_lm_loss(token_pred_out, classifier_out,
                         target_token_indices, target_clf_labels)
    jax.block_until_ready(loss1)
    ref1 = _reference_loss(token_pred_out, classifier_out,
                           target_token_indices, target_clf_labels)
    assert jnp.allclose(loss1, ref1, atol=1e-5, rtol=1e-5), (loss1, ref1)

    # ---- Test 2: bf16, tiny tile budget -> wide-vocab fallback path, ragged rows + vocab ----
    k5, k6, k7, k8 = jax.random.split(jax.random.PRNGKey(1), 4)
    B2, S2, V2, C2 = 2, 10, 200, 4   # N=20 (ragged vs tm=16), V=200 (ragged vs tv=128)
    token_pred_out2 = jax.nn.log_softmax(
        jax.random.normal(k5, (B2, S2, V2), dtype=jnp.float32), axis=-1
    ).astype(jnp.bfloat16)
    classifier_out2 = jax.nn.log_softmax(
        jax.random.normal(k6, (B2, C2), dtype=jnp.float32), axis=-1)
    target_token_indices2 = jax.random.randint(k7, (B2, S2), 0, V2, dtype=jnp.int32)
    target_token_indices2 = target_token_indices2.at[1, 3].set(PAD_INDEX)
    target_clf_labels2 = jax.random.randint(k8, (B2,), 1, C2, dtype=jnp.int32)

    loss2 = bert_lm_loss(token_pred_out2, classifier_out2,
                         target_token_indices2, target_clf_labels2,
                         tile_budget_bytes=2048)   # forces the tiled-vocab fallback
    jax.block_until_ready(loss2)
    ref2 = _reference_loss(token_pred_out2, classifier_out2,
                           target_token_indices2, target_clf_labels2)
    assert jnp.allclose(loss2, ref2, atol=1e-4, rtol=1e-5), (loss2, ref2)

    # ---- Test 3: N < 8 edge case (full-array blocks, single grid step) ----
    k9, k10, k11, k12 = jax.random.split(jax.random.PRNGKey(2), 4)
    B3, S3, V3, C3 = 1, 4, 640, 6
    token_pred_out3 = jax.nn.log_softmax(
        jax.random.normal(k9, (B3, S3, V3), dtype=jnp.float32), axis=-1)
    classifier_out3 = jax.nn.log_softmax(
        jax.random.normal(k10, (B3, C3), dtype=jnp.float32), axis=-1)
    target_token_indices3 = jax.random.randint(k11, (B3, S3), 0, V3, dtype=jnp.int32)
    target_token_indices3 = target_token_indices3.at[0, 2].set(PAD_INDEX)
    target_clf_labels3 = jax.random.randint(k12, (B3,), 1, C3, dtype=jnp.int32)

    loss3 = bert_lm_loss(token_pred_out3, classifier_out3,
                         target_token_indices3, target_clf_labels3)
    jax.block_until_ready(loss3)
    ref3 = _reference_loss(token_pred_out3, classifier_out3,
                           target_token_indices3, target_clf_labels3)
    assert jnp.allclose(loss3, ref3, atol=1e-5, rtol=1e-5), (loss3, ref3)

    print("KERNEL_OK")
</pallas_src>

<mosaic_0001>
module attributes {stable_mosaic.version = 11 : i64} {
  func.func @_token_nll_rowsum_1pass_kernel(%arg0: i32, %arg1: memref<8x32xf32, #tpu.memory_space<vmem>>, %arg2: memref<8x1xi32, #tpu.memory_space<vmem>>, %arg3: memref<8x1xf32, #tpu.memory_space<vmem>>) attributes {dimension_semantics = [#tpu.dimension_semantics<parallel>], iteration_bounds = array<i64: 2>, scalar_prefetch = 0 : i64, scratch_operands = 0 : i64, tpu.core_type = #tpu.core_type<tc>, window_params = [{transform_indices = @transform_0, window_bounds = array<i64: 8, 32>}, {transform_indices = @transform_1, window_bounds = array<i64: 8, 1>}, {transform_indices = @transform_2, window_bounds = array<i64: 8, 1>}]} {
    %c0 = arith.constant 0 : index
    %c0_0 = arith.constant 0 : index
    %0 = vector.load %arg1[%c0, %c0_0] : memref<8x32xf32, #tpu.memory_space<vmem>>, vector<8x32xf32>
    %1 = tpu.iota {dimensions = array<i32: 1>} : vector<8x32xi32>
    %c0_1 = arith.constant 0 : index
    %c0_2 = arith.constant 0 : index
    %2 = vector.load %arg2[%c0_1, %c0_2] : memref<8x1xi32, #tpu.memory_space<vmem>>, vector<8x1xi32>
    %3 = vector.broadcast %2 : vector<8x1xi32> to vector<8x32xi32>
    %4 = arith.cmpi eq, %1, %3 : vector<8x32xi32>
    %cst = arith.constant 0.000000e+00 : f32
    %5 = vector.broadcast %cst : f32 to vector<8x32xf32>
    %6 = arith.select %4, %0, %5 : vector<8x32xi1>, vector<8x32xf32>
    %cst_3 = arith.constant dense<0.000000e+00> : vector<8xf32>
    %7 = vector.multi_reduction <add>, %6, %cst_3 [1] : vector<8x32xf32> to vector<8xf32>
    %8 = vector.shape_cast %7 : vector<8xf32> to vector<8x1xf32>
    %c0_4 = arith.constant 0 : index
    %c0_5 = arith.constant 0 : index
    %9 = vector.load %arg3[%c0_4, %c0_5] : memref<8x1xf32, #tpu.memory_space<vmem>>, vector<8x1xf32>
    tpu.vector_store %arg3[%c0_4, %c0_5], %8 {strides = array<i32>} : memref<8x1xf32, #tpu.memory_space<vmem>>, vector<8x1xf32>,
    return
  }
  func.func @transform_0(%arg0: i32) -> (i32, i32) {
    %c0_i32 = arith.constant 0 : i32
    %c0_i32_0 = arith.constant 0 : i32
    return %arg0, %c0_i32 : i32, i32
  }
  func.func @transform_1(%arg0: i32) -> (i32, i32) {
    %c0_i32 = arith.constant 0 : i32
    %c0_i32_0 = arith.constant 0 : i32
    return %arg0, %c0_i32 : i32, i32
  }
  func.func @transform_2(%arg0: i32) -> (i32, i32) {
    %c0_i32 = arith.constant 0 : i32
    %c0_i32_0 = arith.constant 0 : i32
    return %arg0, %c0_i32 : i32, i32
  }
}

</mosaic_0001>

<bundles_post_ra>
// kernel: tpu_custom_call.1
= control target key start
LH: loop header
LB: loop body
LE: loop exit
PB: predicated region body
PF: predicated region fallthrough
CT: control target
= control target key end

     0   :  { %s280_s9 = smov 0   ;;  %s300_s0 = inlined_call_operand.vmem [shape: f32[16,32], index: 0, kind: input, shape index: {}]   ;;  %s301_s1 = inlined_call_operand.vmem [shape: s32[16,1], index: 1, kind: input, shape index: {}]   ;;  %s302_s2 = inlined_call_operand.vmem [shape: f32[16,1], index: 2, kind: output, shape index: {}]  }
   0x1 LB: > { %s236_s10 = sadd.s32 4294967295, %s262_s9   ;;  %p240_p0 = scmp.ge.s32.totalorder %s262_s9, 1  ;;  %s262_s9 = sphi %s280_s9, %s12_s9  }
   0x2   : > { %p120_p1 = scmp.lt.s32.totalorder %s262_s9, 3 }
   0x4   : > { %p121_p2 = pnand %p240_p0, %p120_p1 }
   0x5   : > { %p144_p3 = scmp.lt.s32.totalorder (!%p121_p2), %s236_s10, 1  ;;  %v264_v0 = vmov (!%p121_p2), 0   ;;  %v157_v2 = vlaneseq (!%p121_p2)  ;;  %vm165_vm0 = vcmask (!%p121_p2), 261120   ;;  %vm169_vm2 = vcmask (!%p121_p2), 7168  }
   0x6   : > { %124 = sbr.rel (%p121_p2) target bundleno = 291 (0x123), region = 28  ;;  %255 = vset.pattern.permute.xlu0 (!%p121_p2), %v264_v0 }
   0x7   : > { %v158_v3 = vand.u32 (!%p121_p2), 127, %v157_v2 }
   0xd   : > { %s304_s10 = smov (!%p144_p3, %s236_s10), 1 }
   0xe   : > { %s241_s11 = sshll.u32 %s304_s10, 3 }
   0xf   : > { %s151_s14 = scalar_lea.vmem %s301_s1, %s241_s11  ;;  %s147_s17 = scalar_lea.vmem %s300_s0, %s241_s11 }
  0x10   : > { %v159_v1 = vld [vmem:[%s151_s14] sm:$0xff]  ;;  %s155_s20 = scalar_lea.vmem %s302_s2, %s241_s11 }
  0x11   : > { %161 = vperm.xlu0 %255, %v159_v1   ;;  %v156_v4 = vld [vmem:[%s147_s17] sm:$0xff] }
  0x90   : > { %v162_v5 = vpop.permute.xlu0 %161 }
  0x91   : > { %vm163_vm1 = vcmp.eq.s32.totalorder %v158_v3, %v162_v5 }
  0x92   : > { %v164_v6 = vsel %vm163_vm1, %v156_v4, 0.0 }
  0x93   : > { %v166_v7 = vsel %vm165_vm0, %v164_v6, 0.0 }
  0x94   : > { %167 = vadd.xlane.f32.xlu0 %v166_v7 }
 0x121   : > { %v168_v8 = vpop.xlane.xlu0 %167 }
 0x122   : > { %170 = vst.msk [vmem:[%s155_s20] sm:$0xff] %vm169_vm2, %v168_v8 }
 0x123 PF: > { %s12_s9 = sadd.s32 1, %s262_s9  }
 0x124   : > { %p9_p4 = scmp.ge.s32.totalorder %s12_s9, 4  }
 0x126   :  { %11 = sbr.rel (!%p9_p4) target bundleno = 1 (0x1), region = 61 }

</bundles_post_ra>
